<compile_context>
chip_gen: v6e
topology: v6e:2x2x1
jax: 0.10.0
libtpu: 0.0.40
codegen_flags: <defaults>
</compile_context>

<pallas_src>
import math

import jax
import jax.numpy as jnp
from jax.experimental import pallas as pl
from jax.experimental.pallas import tpu as pltpu


# ---------------------------------------------------------------------------
# Helpers: padding / generation-aware tile policy
# ---------------------------------------------------------------------------
def _round_up(v: int, m: int) -> int:
    return ((v + m - 1) // m) * m


def _vmem_capacity_bytes() -> int:
    """Physical VMEM of the local chip; falls back to the smallest (v7x, 64 MiB)."""
    try:
        info = pltpu.get_tpu_info()
        cap = getattr(info, "vmem_capacity_bytes", None)
        if cap:
            return int(cap)
    except Exception:
        pass
    return 64 << 20


def _tile_policy(B: int, K: int, H: int):
    """Return (TM, TN, TK, vmem_limit_bytes) for this shape on this chip."""
    vmem = _vmem_capacity_bytes()
    big_vmem = vmem >= (100 << 20)  # v5e / v6e have 128 MiB; v7x has 64 MiB

    if B <= 64:
        # GEMV / decode regime: weight-read bound; few, long lane-dense streams
        # of W amortize the ~0.35us per-grid-step overhead.
        TM = _round_up(B, 16)
        TN = min(_round_up(H, 128), 2048 if big_vmem else 1024)
        TK = min(_round_up(K, 128), 2048)
    else:
        TM = min(_round_up(B, 16), 512)
        TN = min(_round_up(H, 128), 1024 if big_vmem else 512)
        TK = min(_round_up(K, 128), 512)

    # Megacore (v7x, 2 TCs): if the whole batch fits one TM block, keep at
    # least 2 blocks along the hidden "parallel" axis so the second TC works.
    if not big_vmem and _round_up(B, TM) == TM:
        while TN > 128 and _round_up(H, TN) // TN < 2:
            TN //= 2

    vmem_limit = min(96 << 20, vmem) if big_vmem else (48 << 20)
    return TM, TN, TK, vmem_limit


# ---------------------------------------------------------------------------
# Pallas kernels
# ---------------------------------------------------------------------------
def _matmul_kernel(x_ref, w_ref, o_ref, acc_ref):
    """y = x @ W, tiled over (i, j, k) with an f32 VMEM accumulator."""
    k = pl.program_id(2)

    @pl.when(k == 0)
    def _():
        acc_ref[...] = jnp.zeros_like(acc_ref)

    acc_ref[...] += jnp.dot(
        x_ref[...], w_ref[...], preferred_element_type=jnp.float32
    )

    @pl.when(k == pl.num_programs(2) - 1)
    def _():
        o_ref[...] = acc_ref[...].astype(o_ref.dtype)


def _matmul_bias_kernel(x_ref, w_ref, b_ref, o_ref, acc_ref):
    """y = x @ W + bias; bias added once in the f32 epilogue."""
    k = pl.program_id(2)

    @pl.when(k == 0)
    def _():
        acc_ref[...] = jnp.zeros_like(acc_ref)

    acc_ref[...] += jnp.dot(
        x_ref[...], w_ref[...], preferred_element_type=jnp.float32
    )

    @pl.when(k == pl.num_programs(2) - 1)
    def _():
        o_ref[...] = (acc_ref[...] + b_ref[...].astype(jnp.float32)).astype(
            o_ref.dtype
        )


# ---------------------------------------------------------------------------
# pallas_call wrapper (expects already-padded operands)
# ---------------------------------------------------------------------------
def _pallas_matmul(xp, wp, bias_p, *, TM, TN, TK, out_dtype, vmem_limit):
    Bp, Kp = xp.shape
    Kw, Hp = wp.shape
    assert Kp == Kw and Bp % TM == 0 and Hp % TN == 0 and Kp % TK == 0

    grid = (Bp // TM, Hp // TN, Kp // TK)
    x_spec = pl.BlockSpec((TM, TK), lambda i, j, k: (i, k))
    w_spec = pl.BlockSpec((TK, TN), lambda i, j, k: (k, j))
    o_spec = pl.BlockSpec((TM, TN), lambda i, j, k: (i, j))

    cparams = pltpu.CompilerParams(
        dimension_semantics=("parallel", "parallel", "arbitrary"),
        vmem_limit_bytes=vmem_limit,
    )
    scratch = [pltpu.VMEM((TM, TN), jnp.float32)]
    out_shape = jax.ShapeDtypeStruct((Bp, Hp), out_dtype)

    if bias_p is None:
        return pl.pallas_call(
            _matmul_kernel,
            out_shape=out_shape,
            grid=grid,
            in_specs=[x_spec, w_spec],
            out_specs=o_spec,
            scratch_shapes=scratch,
            compiler_params=cparams,
        )(xp, wp)

    return pl.pallas_call(
        _matmul_bias_kernel,
        out_shape=out_shape,
        grid=grid,
        in_specs=[x_spec, w_spec, o_spec],
        out_specs=o_spec,
        scratch_shapes=scratch,
        compiler_params=cparams,
    )(xp, wp, bias_p)


# ---------------------------------------------------------------------------
# Module port
# ---------------------------------------------------------------------------
class DynamicBiasBase:
    """JAX/Pallas port of the PyTorch DynamicBiasBase module."""

    def __init__(
        self,
        input_size: int,
        hidden_size: int,
        key=None,
        compute_dtype=jnp.bfloat16,
        out_dtype=jnp.float32,
    ):
        self.input_size = input_size
        self.hidden_size = hidden_size
        self.compute_dtype = compute_dtype
        self.out_dtype = out_dtype

        if key is None:
            key = jax.random.PRNGKey(0)
        bound = 1.0 / math.sqrt(input_size)
        # Canonical linear weight (the base class defines no parameters itself).
        self.weight = jax.random.uniform(
            key, (input_size, hidden_size), jnp.float32, minval=-bound, maxval=bound
        )

        # Cached padded/cast weight (rebuilt only if padded geometry changes).
        # NOTE: if self.weight is mutated (training), clear this cache.
        self._wp_cache = {}

        # Dynamic per-batch bias state, kept padded to (Bp, Hp) in f32.
        self._bias_padded = None
        self._bias_batch = 0

    # -- API-compatible surface ------------------------------------------------
    @property
    def bias(self):
        if self._bias_padded is None:
            return None
        return self._bias_padded[: self._bias_batch, : self.hidden_size]

    def reset_bias(self):
        """Reset the current bias state."""
        self._bias_padded = None
        self._bias_batch = 0

    def _init_bias(self, batch_size: int):
        """Initialize bias tensor for a new sequence (API compat; the hot path
        keeps a padded zero state instead)."""
        return jnp.zeros((batch_size, self.hidden_size), jnp.float32)

    # -- internals ---------------------------------------------------------------
    def _padded_weight(self, Kp: int, Hp: int):
        key = (Kp, Hp, jnp.dtype(self.compute_dtype).name)
        wp = self._wp_cache.get(key)
        if wp is None:
            K, H = self.weight.shape
            wp = self.weight.astype(self.compute_dtype)
            if (Kp, Hp) != (K, H):
                # Zero-pad along K is required for a correct reduction.
                wp = jnp.pad(wp, ((0, Kp - K), (0, Hp - H)))
            self._wp_cache[key] = wp
        return wp

    # -- forward -----------------------------------------------------------------
    def forward(self, x):
        B, K = x.shape
        H = self.hidden_size
        assert K == self.input_size, "input_size mismatch"

        TM, TN, TK, vmem_limit = _tile_policy(B, K, H)
        Bp, Kp, Hp = _round_up(B, TM), _round_up(K, TK), _round_up(H, TN)

        # x changes every call: pad + cast here (zero-pad along K keeps the
        # reduction exact).
        xp = x.astype(self.compute_dtype)
        if (Bp, Kp) != (B, K):
            xp = jnp.pad(xp, ((0, Bp - B), (0, Kp - K)))

        wp = self._padded_weight(Kp, Hp)

        # Stale state from a different batch size / geometry -> reinitialize.
        if self._bias_padded is not None and (
            self._bias_batch != B or self._bias_padded.shape != (Bp, Hp)
        ):
            self._bias_padded = None

        if self._bias_padded is None:
            # bias == 0: skip the bias DMA entirely; the zero state is a cheap
            # XLA fill in the wrapper (no kernel writeback of constant zeros).
            y_p = _pallas_matmul(
                xp, wp, None, TM=TM, TN=TN, TK=TK,
                out_dtype=self.out_dtype, vmem_limit=vmem_limit,
            )
            self._bias_padded = jnp.zeros((Bp, Hp), jnp.float32)
            self._bias_batch = B
        else:
            y_p = _pallas_matmul(
                xp, wp, self._bias_padded, TM=TM, TN=TN, TK=TK,
                out_dtype=self.out_dtype, vmem_limit=vmem_limit,
            )

        return y_p[:B, :H]

    def __call__(self, x):
        return self.forward(x)


# ---------------------------------------------------------------------------
# Main
# ---------------------------------------------------------------------------
if __name__ == "__main__":
    batch, input_size, hidden_size = 2, 32, 32

    key = jax.random.PRNGKey(0)
    kx, kw = jax.random.split(key)
    x = jax.random.normal(kx, (batch, input_size), dtype=jnp.float32)

    layer = DynamicBiasBase(input_size, hidden_size, key=kw)

    # First call: bias-is-None path (plain matmul kernel, zero state from wrapper).
    y1 = jax.block_until_ready(layer(x))
    # Second call: matmul + bias-add path (bias state now a zero buffer).
    y2 = jax.block_until_ready(layer(x))

    # Pure-JAX reference with the same bf16-operand / f32-accumulate recipe.
    ref = jnp.dot(
        x.astype(jnp.bfloat16),
        layer.weight.astype(jnp.bfloat16),
        preferred_element_type=jnp.float32,
    )

    assert y1.shape == (batch, hidden_size)
    assert y2.shape == (batch, hidden_size)
    assert layer.bias is not None and layer.bias.shape == (batch, hidden_size)
    assert bool(jnp.all(layer.bias == 0.0))
    assert jnp.allclose(y1, ref, atol=1e-2, rtol=1e-2)
    assert jnp.allclose(y2, ref, atol=1e-2, rtol=1e-2)

    print("KERNEL_OK")
</pallas_src>

<mosaic_0001>
module attributes {stable_mosaic.version = 11 : i64} {
  func.func @_matmul_kernel(%arg0: i32, %arg1: i32, %arg2: i32, %arg3: memref<16x128xbf16, #tpu.memory_space<vmem>>, %arg4: memref<128x128xbf16, #tpu.memory_space<vmem>>, %arg5: memref<16x128xf32, #tpu.memory_space<vmem>>, %arg6: memref<16x128xf32, #tpu.memory_space<vmem>>) attributes {dimension_semantics = [#tpu.dimension_semantics<parallel>, #tpu.dimension_semantics<parallel>, #tpu.dimension_semantics<arbitrary>], iteration_bounds = array<i64: 1, 1, 1>, scalar_prefetch = 0 : i64, scratch_operands = 1 : i64, tpu.core_type = #tpu.core_type<tc>, window_params = [{transform_indices = @transform_0, window_bounds = array<i64: 16, 128>}, {transform_indices = @transform_1, window_bounds = array<i64: 128, 128>}, {transform_indices = @transform_2, window_bounds = array<i64: 16, 128>}]} {
    %c0_i32 = arith.constant 0 : i32
    %0 = arith.cmpi eq, %arg2, %c0_i32 : i32
    %1 = arith.extui %0 : i1 to i32
    %c0_i32_0 = arith.constant 0 : i32
    %2 = arith.cmpi ne, %1, %c0_i32_0 : i32
    scf.if %2 {
      %cst_10 = arith.constant 0.000000e+00 : f32
      %12 = vector.broadcast %cst_10 : f32 to vector<16x128xf32>
      %c0_11 = arith.constant 0 : index
      %c0_12 = arith.constant 0 : index
      %13 = vector.load %arg6[%c0_11, %c0_12] : memref<16x128xf32, #tpu.memory_space<vmem>>, vector<16x128xf32>
      tpu.vector_store %arg6[%c0_11, %c0_12], %12 {strides = array<i32>} : memref<16x128xf32, #tpu.memory_space<vmem>>, vector<16x128xf32>,
    } else {
    }
    %c0 = arith.constant 0 : index
    %c0_1 = arith.constant 0 : index
    %3 = vector.load %arg6[%c0, %c0_1] : memref<16x128xf32, #tpu.memory_space<vmem>>, vector<16x128xf32>
    %c0_2 = arith.constant 0 : index
    %c0_3 = arith.constant 0 : index
    %4 = vector.load %arg3[%c0_2, %c0_3] : memref<16x128xbf16, #tpu.memory_space<vmem>>, vector<16x128xbf16>
    %c0_4 = arith.constant 0 : index
    %c0_5 = arith.constant 0 : index
    %5 = vector.load %arg4[%c0_4, %c0_5] : memref<128x128xbf16, #tpu.memory_space<vmem>>, vector<128x128xbf16>
    %cst = arith.constant dense<0.000000e+00> : vector<16x128xf32>
    %6 = tpu.matmul %4, %5, %cst {dimension_numbers = #tpu.dot_dimension_numbers<[1], [0], [0], [1], [0, 0, 1, 1], [], []>} : vector<16x128xbf16>, vector<128x128xbf16>, vector<16x128xf32> -> vector<16x128xf32>
    %7 = arith.addf %3, %6 : vector<16x128xf32>
    %c0_6 = arith.constant 0 : index
    %c0_7 = arith.constant 0 : index
    %8 = vector.load %arg6[%c0_6, %c0_7] : memref<16x128xf32, #tpu.memory_space<vmem>>, vector<16x128xf32>
    tpu.vector_store %arg6[%c0_6, %c0_7], %7 {strides = array<i32>} : memref<16x128xf32, #tpu.memory_space<vmem>>, vector<16x128xf32>,
    %c0_i32_8 = arith.constant 0 : i32
    %9 = arith.cmpi eq, %arg2, %c0_i32_8 : i32
    %10 = arith.extui %9 : i1 to i32
    %c0_i32_9 = arith.constant 0 : i32
    %11 = arith.cmpi ne, %10, %c0_i32_9 : i32
    scf.if %11 {
      %c0_10 = arith.constant 0 : index
      %c0_11 = arith.constant 0 : index
      %12 = vector.load %arg6[%c0_10, %c0_11] : memref<16x128xf32, #tpu.memory_space<vmem>>, vector<16x128xf32>
      %c0_12 = arith.constant 0 : index
      %c0_13 = arith.constant 0 : index
      %13 = vector.load %arg5[%c0_12, %c0_13] : memref<16x128xf32, #tpu.memory_space<vmem>>, vector<16x128xf32>
      tpu.vector_store %arg5[%c0_12, %c0_13], %12 {strides = array<i32>} : memref<16x128xf32, #tpu.memory_space<vmem>>, vector<16x128xf32>,
    } else {
    }
    return
  }
  func.func @transform_0(%arg0: i32, %arg1: i32, %arg2: i32) -> (i32, i32) {
    %c0_i32 = arith.constant 0 : i32
    return %arg0, %arg2 : i32, i32
  }
  func.func @transform_1(%arg0: i32, %arg1: i32, %arg2: i32) -> (i32, i32) {
    %c0_i32 = arith.constant 0 : i32
    return %arg2, %arg1 : i32, i32
  }
  func.func @transform_2(%arg0: i32, %arg1: i32, %arg2: i32) -> (i32, i32) {
    %c0_i32 = arith.constant 0 : i32
    return %arg0, %arg1 : i32, i32
  }
}

</mosaic_0001>

<bundles_post_ra>
// kernel: tpu_custom_call.1
= control target key start
LH: loop header
LB: loop body
LE: loop exit
PB: predicated region body
PF: predicated region fallthrough
CT: control target
= control target key end

     0   :  { %7 = vsyncpa [#allocation4], 0  ;;  %s346_s0 = inlined_call_operand.hbm [shape: bf16[16,128], index: 0, kind: input, shape index: {}]   ;;  %s347_s1 = inlined_call_operand.hbm [shape: bf16[128,128], index: 1, kind: input, shape index: {}]   ;;  %s348_s2 = inlined_call_operand.hbm [shape: f32[16,128], index: 2, kind: output, shape index: {}]  }
   0x1   :  { %8 = vsyncpa [#allocation7], 0 }
   0x2   :  { %9 = vsyncpa [#allocation5], 0  ;;  %s313_s9 = smov [#allocation3]  }
   0x3   :  { %s15_s10 = sshll.u32 %s313_s9, 4  ;;  %s16_s10 = int_to_ptr.vmem [resolvable:$true] %s15_s10 }
   0x4   :  { %s255_s11 = scalar_lea.vmem %s16_s10, 128  ;;  %p260_p1 = scmp.lt.s32.totalorder %s16_s10, %s16_s10 }
   0x5   :  { %p256_p0 = scmp.ne.s32.totalorder %s16_s10, %s255_s11  ;;  %p261_p2 = scmp.lt.s32.totalorder %s255_s11, %s255_s11 }
   0x7   :  { %p262_p3 = por %p261_p2, %p260_p1 }
   0x9   :  { %p263_p4 = pnand %p262_p3, %p256_p0 }
   0xb   :  { %266 = shalt.err (!%p263_p4)
}
   0xc   :  { %s314_s12 = smov 64   ;;  %s315_s13 = smov 4  }
   0xd   :  { %21 = dma.hbm_to_vmem [thread:$0]  %s346_s0, 128, %s16_s10, [#allocation4], %s314_s12, %s314_s12, %s315_s13  }
   0xe   :  { %s316_s16 = smov [#allocation6]  }
   0xf   :  { %s27_s17 = sshll.u32 %s316_s16, 4  ;;  %s28_s17 = int_to_ptr.vmem [resolvable:$true] %s27_s17 }
  0x10   :  { %s275_s18 = scalar_lea.vmem %s28_s17, 1024  ;;  %p280_p6 = scmp.lt.s32.totalorder %s28_s17, %s28_s17 }
  0x11   :  { %p276_p5 = scmp.ne.s32.totalorder %s28_s17, %s275_s18  ;;  %p281_p7 = scmp.lt.s32.totalorder %s275_s18, %s275_s18 }
  0x13   :  { %p282_p8 = por %p281_p7, %p280_p6 }
  0x15   :  { %p283_p9 = pnand %p282_p8, %p276_p5 }
  0x17   :  { %286 = shalt.err (!%p283_p9)
}
  0x18   :  { %33 = dma.hbm_to_vmem [thread:$0]  %s347_s1, 1024, %s28_s17, [#allocation7], %s314_s12, %s314_s12, %s315_s13  }
  0x19   :  { %307 = dma.done.wait [#allocation4], 128  }
  0x1a   :  { %308 = vsyncadd [#allocation4], 4294967168 }
  0x1b   :  { %309 = dma.done.wait [#allocation7], 1024  }
  0x1c   :  { %310 = vsyncadd [#allocation7], 4294966272  ;;  %v317_v0 = vmov 0.0   ;;  %vm318_vm0 = vmmov 0   ;;  %v238_v1 = vld [vmem:[#allocation6 + $0x38] sm:$0xff]   ;;  %v239_v2 = vld [vmem:[#allocation6 + $0x30] sm:$0xff]  }
  0x1d   :  { %209 = vmatprep.subr.bf16.mxu0 %v317_v0  ;;  %225 = vmatprep.mubr.msk.bf16.mxu0 %vm318_vm0, %v317_v0  ;;  %v240_v3 = vld [vmem:[#allocation6 + $0x28] sm:$0xff]   ;;  %v241_v4 = vld [vmem:[#allocation6 + $0x20] sm:$0xff]   ;;  %v242_v5 = vld [vmem:[#allocation6 + $0x18] sm:$0xff]   ;;  %s319_s0 = smov [#allocation8]  }
  0x1e   :  { %210 = vmatpush3.bf16.msra.mxu0 %v238_v1  ;;  %v243_v6 = vld [vmem:[#allocation6 + $0x10] sm:$0xff]   ;;  %v244_v7 = vld [vmem:[#allocation6 + $0x8] sm:$0xff]   ;;  %v245_v8 = vld [vmem:[#allocation6] sm:$0xff]   ;;  %s178_s1 = sshll.u32 %s319_s0, 4  ;;  %s179_s1 = int_to_ptr.vmem [resolvable:$true] %s178_s1 }
  0x1f   :  { %211 = vmatprep.subr.bf16.mxu0 %v317_v0  ;;  %v246_v9 = vld [vmem:[#allocation3] sm:$0xff]   ;;  %s287_s21 = scalar_lea.vmem %s179_s1, 256  ;;  %p292_p11 = scmp.lt.s32.totalorder %s179_s1, %s179_s1 }
  0x20   :  { %p288_p10 = scmp.ne.s32.totalorder %s179_s1, %s287_s21  ;;  %p293_p12 = scmp.lt.s32.totalorder %s287_s21, %s287_s21 }
  0x22   :  { %212 = vmatpush3.bf16.msra.mxu0 %v239_v2  ;;  %p294_p13 = por %p293_p12, %p292_p11 }
  0x23   :  { %213 = vmatprep.subr.bf16.mxu0 %v317_v0 }
  0x24   :  { %p295_p0 = pnand %p294_p13, %p288_p10 }
  0x26   :  { %214 = vmatpush3.bf16.msra.mxu0 %v240_v3 }
  0x27   :  { %215 = vmatprep.subr.bf16.mxu0 %v317_v0 }
  0x2a   :  { %216 = vmatpush3.bf16.msra.mxu0 %v241_v4 }
  0x2b   :  { %217 = vmatprep.subr.bf16.mxu0 %v317_v0 }
  0x2e   :  { %218 = vmatpush3.bf16.msra.mxu0 %v242_v5 }
  0x2f   :  { %219 = vmatprep.subr.bf16.mxu0 %v317_v0 }
  0x32   :  { %220 = vmatpush3.bf16.msra.mxu0 %v243_v6 }
  0x33   :  { %221 = vmatprep.subr.bf16.mxu0 %v317_v0 }
  0x36   :  { %222 = vmatpush3.bf16.msra.mxu0 %v244_v7 }
  0x37   :  { %223 = vmatprep.subr.bf16.mxu0 %v317_v0 }
  0x3a   :  { %224 = vmatpush3.bf16.msra.mxu0 %v245_v8 }
  0x3d   :  { %226 = vmatmul.mubr.bf16.vlgmr.msra.gmra.mxu0 %v246_v9 }
  0xfd   :  { %v155_v10 = vpop.f32.mrf.mxu0 }
  0xfe   :  { %171 = vst [vmem:[#allocation8] sm:$0xff] %v155_v10 }
  0xff   :  { %v227_v11 = vpop.f32.mrf.mxu0 }
 0x101   :  { %v158_v12 = vpop.f32.mrf.mxu0 }
 0x102   :  { %172 = vst [vmem:[#allocation8 + $0x8] sm:$0xff] %v158_v12 }
 0x103   :  { %v228_v13 = vpop.f32.mrf.mxu0 }
 0x104   :  { %298 = shalt.err (!%p295_p0)
}
 0x105   :  { %s320_s22 = smov 128   ;;  %s321_s23 = smov 8  }
 0x106   :  { %184 = dma.vmem_to_hbm [thread:$0]  %s179_s1, 256, %s348_s2, [#allocation5], %s320_s22, %s320_s22, %s321_s23  }
 0x107   :  { %311 = dma.done.wait [#allocation5], 256  }
 0x108   :  { %312 = vsyncadd [#allocation5], 4294967040 }
 0x109   :  { %188 = vsyncpa [#allocation4], 1 }
 0x10a   :  { %189 = vsyncpa [#allocation7], 1 }
 0x10b   :  { %190 = vsyncpa [#allocation5], 1 }

</bundles_post_ra>
